<compile_context>
chip_gen: v7x
topology: tpu7x:2x2x1
jax: 0.10.0
libtpu: 0.0.40
codegen_flags: <defaults>
</compile_context>

<pallas_src>
import jax
import jax.numpy as jnp
from jax.experimental import pallas as pl
from jax.experimental.pallas import tpu as pltpu

EPS = 1e-5
_SUBLANES = 8                            # f32 sublane granularity
_BLOCK_BUDGET_BYTES = 4 * 1024 * 1024    # per-input-block budget (safe on v5e/v6e/v7x)


def _bn_relu_kernel(x_ref, g_ref, b_ref, o_ref):
    # x_ref: (N, TC, HW)   g_ref, b_ref: (TC, 1)   o_ref: (N, TC, HW)
    x = x_ref[...].astype(jnp.float32)
    n, _, hw = x.shape
    m = jnp.float32(n * hw)

    # One traversal of the block: per-channel sum and sum-of-squares.
    # Reduce the lane (HW) axis first (XLU), then the small leading N axis.
    s = jnp.sum(jnp.sum(x, axis=2, keepdims=True), axis=0, keepdims=True)        # (1, TC, 1)
    sq = jnp.sum(jnp.sum(x * x, axis=2, keepdims=True), axis=0, keepdims=True)   # (1, TC, 1)

    mean = s / m
    var = jnp.maximum(sq / m - mean * mean, 0.0)     # biased variance (training-mode BN)
    inv_std = jax.lax.rsqrt(var + EPS)

    gamma = g_ref[...][None, :, :]                   # (1, TC, 1)
    beta = b_ref[...][None, :, :]                    # (1, TC, 1)

    # Fold the affine into per-channel scale/bias: y = max(x*scale + bias, 0)
    scale = inv_std * gamma                          # (1, TC, 1)
    bias = beta - mean * scale                       # (1, TC, 1)

    o_ref[...] = jnp.maximum(x * scale + bias, 0.0).astype(o_ref.dtype)


def _choose_channel_tile(c_pad, n, hw, itemsize):
    """Largest multiple-of-8 channel tile whose (N, TC, HW) block fits the VMEM
    budget and evenly divides the (padded) channel count."""
    bytes_per_channel = max(n * hw * itemsize, 1)
    tc = (_BLOCK_BUDGET_BYTES // bytes_per_channel) // _SUBLANES * _SUBLANES
    tc = max(_SUBLANES, tc)
    tc = min(tc, c_pad)
    while c_pad % tc:
        tc -= _SUBLANES
    return max(tc, _SUBLANES)


def batchnorm_relu(x_nchw, gamma, beta):
    """x_nchw: (N, C, H, W);  gamma, beta: (C,).  Returns ReLU(BatchNorm2d(x))."""
    n, c, h, w = x_nchw.shape
    hw = h * w

    # Free, contiguous reshape (no transpose): NCHW -> (N, C, H*W)
    x3d = x_nchw.reshape(n, c, hw)

    # Pad channels up to a multiple of 8 so every tile is (8,128)-aligned.
    c_pad = -(-c // _SUBLANES) * _SUBLANES
    gamma = gamma.astype(jnp.float32)
    beta = beta.astype(jnp.float32)
    if c_pad != c:
        x3d = jnp.pad(x3d, ((0, 0), (0, c_pad - c), (0, 0)))
        gamma = jnp.pad(gamma, (0, c_pad - c))
        beta = jnp.pad(beta, (0, c_pad - c))
    g2d = gamma.reshape(c_pad, 1)
    b2d = beta.reshape(c_pad, 1)

    itemsize = jnp.dtype(x_nchw.dtype).itemsize
    tc = _choose_channel_tile(c_pad, n, hw, itemsize)
    grid = (c_pad // tc,)

    # VMEM request: in + out blocks, double-buffered, plus slack for params.
    block_bytes = n * tc * hw * itemsize
    vmem_limit = int(min(48 * 1024 * 1024, max(32 * 1024 * 1024, 5 * block_bytes)))
    # TODO(synk): for very large N*H*W per channel tile (block > budget even at
    # TC=8), switch to a two-phase grid (accumulate sum/sumsq over M tiles, then
    # normalize) instead of keeping the full reduction extent resident.

    out3d = pl.pallas_call(
        _bn_relu_kernel,
        out_shape=jax.ShapeDtypeStruct((n, c_pad, hw), x_nchw.dtype),
        grid=grid,
        in_specs=[
            pl.BlockSpec((n, tc, hw), lambda j: (0, j, 0)),  # x: channel-tiled
            pl.BlockSpec((tc, 1), lambda j: (j, 0)),          # gamma
            pl.BlockSpec((tc, 1), lambda j: (j, 0)),          # beta
        ],
        out_specs=pl.BlockSpec((n, tc, hw), lambda j: (0, j, 0)),
        compiler_params=pltpu.CompilerParams(
            dimension_semantics=("parallel",),
            vmem_limit_bytes=vmem_limit,
        ),
    )(x3d, g2d, b2d)

    if c_pad != c:
        out3d = out3d[:, :c, :]
    return out3d.reshape(n, c, h, w)


def _reference(x_nchw, gamma, beta):
    mean = jnp.mean(x_nchw, axis=(0, 2, 3), keepdims=True)
    var = jnp.mean((x_nchw - mean) ** 2, axis=(0, 2, 3), keepdims=True)
    y = (x_nchw - mean) * jax.lax.rsqrt(var + EPS)
    y = y * gamma.reshape(1, -1, 1, 1) + beta.reshape(1, -1, 1, 1)
    return jnp.maximum(y, 0.0)


if __name__ == "__main__":
    key = jax.random.PRNGKey(0)
    kx, kg, kb = jax.random.split(key, 3)

    N, C, H, W = 2, 4, 16, 16
    x = jax.random.normal(kx, (N, C, H, W), dtype=jnp.float32)
    # PyTorch default init is gamma=1, beta=0; perturb to exercise the affine path.
    gamma = 1.0 + 0.1 * jax.random.normal(kg, (C,), dtype=jnp.float32)
    beta = 0.1 * jax.random.normal(kb, (C,), dtype=jnp.float32)

    out = batchnorm_relu(x, gamma, beta)
    out = jax.block_until_ready(out)

    ref = _reference(x, gamma, beta)
    assert out.shape == (N, C, H, W)
    assert jnp.allclose(out, ref, atol=1e-5, rtol=1e-5)

    print("KERNEL_OK")
</pallas_src>

<mosaic_0001>
module attributes {stable_mosaic.version = 11 : i64} {
  func.func @_bn_relu_kernel(%arg0: i32, %arg1: memref<2x8x256xf32, #tpu.memory_space<vmem>>, %arg2: memref<8x1xf32, #tpu.memory_space<vmem>>, %arg3: memref<8x1xf32, #tpu.memory_space<vmem>>, %arg4: memref<2x8x256xf32, #tpu.memory_space<vmem>>) attributes {dimension_semantics = [#tpu.dimension_semantics<parallel>], iteration_bounds = array<i64: 1>, scalar_prefetch = 0 : i64, scratch_operands = 0 : i64, tpu.core_type = #tpu.core_type<tc>, window_params = [{transform_indices = @transform_0, window_bounds = array<i64: 2, 8, 256>}, {transform_indices = @transform_1, window_bounds = array<i64: 8, 1>}, {transform_indices = @transform_2, window_bounds = array<i64: 8, 1>}, {transform_indices = @transform_3, window_bounds = array<i64: 2, 8, 256>}]} {
    %c0 = arith.constant 0 : index
    %c0_0 = arith.constant 0 : index
    %c0_1 = arith.constant 0 : index
    %0 = vector.load %arg1[%c0, %c0_0, %c0_1] : memref<2x8x256xf32, #tpu.memory_space<vmem>>, vector<2x8x256xf32>
    %cst = arith.constant dense<0.000000e+00> : vector<2x8xf32>
    %1 = vector.multi_reduction <add>, %0, %cst [2] : vector<2x8x256xf32> to vector<2x8xf32>
    %2 = vector.shape_cast %1 : vector<2x8xf32> to vector<2x8x1xf32>
    %cst_2 = arith.constant dense<0.000000e+00> : vector<8x1xf32>
    %3 = vector.multi_reduction <add>, %2, %cst_2 [0] : vector<2x8x1xf32> to vector<8x1xf32>
    %4 = vector.shape_cast %3 : vector<8x1xf32> to vector<1x8x1xf32>
    %5 = arith.mulf %0, %0 : vector<2x8x256xf32>
    %cst_3 = arith.constant dense<0.000000e+00> : vector<2x8xf32>
    %6 = vector.multi_reduction <add>, %5, %cst_3 [2] : vector<2x8x256xf32> to vector<2x8xf32>
    %7 = vector.shape_cast %6 : vector<2x8xf32> to vector<2x8x1xf32>
    %cst_4 = arith.constant dense<0.000000e+00> : vector<8x1xf32>
    %8 = vector.multi_reduction <add>, %7, %cst_4 [0] : vector<2x8x1xf32> to vector<8x1xf32>
    %9 = vector.shape_cast %8 : vector<8x1xf32> to vector<1x8x1xf32>
    %cst_5 = arith.constant 5.120000e+02 : f32
    %10 = vector.broadcast %cst_5 : f32 to vector<1x8x1xf32>
    %11 = arith.divf %4, %10 : vector<1x8x1xf32>
    %cst_6 = arith.constant 5.120000e+02 : f32
    %12 = vector.broadcast %cst_6 : f32 to vector<1x8x1xf32>
    %13 = arith.divf %9, %12 : vector<1x8x1xf32>
    %14 = arith.mulf %11, %11 : vector<1x8x1xf32>
    %15 = arith.subf %13, %14 : vector<1x8x1xf32>
    %cst_7 = arith.constant 0.000000e+00 : f32
    %16 = vector.broadcast %cst_7 : f32 to vector<1x8x1xf32>
    %17 = arith.maximumf %15, %16 : vector<1x8x1xf32>
    %cst_8 = arith.constant 9.99999974E-6 : f32
    %18 = vector.broadcast %cst_8 : f32 to vector<1x8x1xf32>
    %19 = arith.addf %17, %18 : vector<1x8x1xf32>
    %20 = math.rsqrt %19 : vector<1x8x1xf32>
    %c0_9 = arith.constant 0 : index
    %c0_10 = arith.constant 0 : index
    %21 = vector.load %arg2[%c0_9, %c0_10] : memref<8x1xf32, #tpu.memory_space<vmem>>, vector<8x1xf32>
    %22 = vector.shape_cast %21 : vector<8x1xf32> to vector<1x8x1xf32>
    %c0_11 = arith.constant 0 : index
    %c0_12 = arith.constant 0 : index
    %23 = vector.load %arg3[%c0_11, %c0_12] : memref<8x1xf32, #tpu.memory_space<vmem>>, vector<8x1xf32>
    %24 = vector.shape_cast %23 : vector<8x1xf32> to vector<1x8x1xf32>
    %25 = arith.mulf %20, %22 : vector<1x8x1xf32>
    %26 = arith.mulf %11, %25 : vector<1x8x1xf32>
    %27 = arith.subf %24, %26 : vector<1x8x1xf32>
    %28 = vector.broadcast %25 : vector<1x8x1xf32> to vector<2x8x256xf32>
    %29 = arith.mulf %0, %28 : vector<2x8x256xf32>
    %30 = vector.broadcast %27 : vector<1x8x1xf32> to vector<2x8x256xf32>
    %31 = arith.addf %29, %30 : vector<2x8x256xf32>
    %cst_13 = arith.constant 0.000000e+00 : f32
    %32 = vector.broadcast %cst_13 : f32 to vector<2x8x256xf32>
    %33 = arith.maximumf %31, %32 : vector<2x8x256xf32>
    %c0_14 = arith.constant 0 : index
    %c0_15 = arith.constant 0 : index
    %c0_16 = arith.constant 0 : index
    %34 = vector.load %arg4[%c0_14, %c0_15, %c0_16] : memref<2x8x256xf32, #tpu.memory_space<vmem>>, vector<2x8x256xf32>
    tpu.vector_store %arg4[%c0_14, %c0_15, %c0_16], %33 {strides = array<i32>} : memref<2x8x256xf32, #tpu.memory_space<vmem>>, vector<2x8x256xf32>,
    return
  }
  func.func @transform_0(%arg0: i32) -> (i32, i32, i32) {
    %c0_i32 = arith.constant 0 : i32
    %c0_i32_0 = arith.constant 0 : i32
    %c0_i32_1 = arith.constant 0 : i32
    return %c0_i32, %arg0, %c0_i32_0 : i32, i32, i32
  }
  func.func @transform_1(%arg0: i32) -> (i32, i32) {
    %c0_i32 = arith.constant 0 : i32
    %c0_i32_0 = arith.constant 0 : i32
    return %arg0, %c0_i32 : i32, i32
  }
  func.func @transform_2(%arg0: i32) -> (i32, i32) {
    %c0_i32 = arith.constant 0 : i32
    %c0_i32_0 = arith.constant 0 : i32
    return %arg0, %c0_i32 : i32, i32
  }
  func.func @transform_3(%arg0: i32) -> (i32, i32, i32) {
    %c0_i32 = arith.constant 0 : i32
    %c0_i32_0 = arith.constant 0 : i32
    %c0_i32_1 = arith.constant 0 : i32
    return %c0_i32, %arg0, %c0_i32_0 : i32, i32, i32
  }
}

</mosaic_0001>

<bundles_post_ra>
// kernel: tpu_custom_call.1
= control target key start
LH: loop header
LB: loop body
LE: loop exit
PB: predicated region body
PF: predicated region fallthrough
CT: control target
= control target key end

     0   :  { %8 = vsyncpa [#allocation3], 0  ;;  %s225_s0 = inlined_call_operand.hbm [shape: f32[2,8,256], index: 0, kind: input, shape index: {}]   ;;  %s226_s1 = inlined_call_operand.vmem [shape: f32[8,1], index: 1, kind: input, shape index: {}]   ;;  %s227_s2 = inlined_call_operand.vmem [shape: f32[8,1], index: 2, kind: input, shape index: {}]   ;;  %s228_s3 = inlined_call_operand.hbm [shape: f32[2,8,256], index: 3, kind: output, shape index: {}]  }
   0x1   :  { %9 = vsyncpa [#allocation4], 0  ;;  %s164_s12 = smov [#allocation2]   ;;  %s116_s16 = scalar_lea.hbm %s225_s0, 512 }
   0x2   :  { %s15_s13 = sshll.u32 %s164_s12, 4  ;;  %p117_p0 = scmp.ne.s32.totalorder %s225_s0, %s116_s16  ;;  %s16_s13 = int_to_ptr.vmem [resolvable:$true] %s15_s13 }
   0x3   :  { %p120_p1 = scmp.lt.u32.totalorder %s116_s16, %s225_s0 }
   0x5   :  { %p122_p2 = pnand %p120_p1, %p117_p0 }
   0x7   :  { %125 = shalt.err (!%p122_p2)
}
   0x8   :  { %s126_s21 = scalar_lea.vmem %s16_s13, 512  ;;  %p131_p4 = scmp.lt.s32.totalorder %s16_s13, %s16_s13 }
   0x9   :  { %p127_p3 = scmp.ne.s32.totalorder %s16_s13, %s126_s21  ;;  %p132_p5 = scmp.lt.s32.totalorder %s126_s21, %s126_s21 }
   0xb   :  { %p133_p6 = por %p132_p5, %p131_p4 }
   0xd   :  { %p134_p7 = pnand %p133_p6, %p127_p3 }
   0xf   :  { %137 = shalt.err (!%p134_p7)
}
  0x10   :  { %s165_s22 = smov 256   ;;  %s166_s23 = smov 16  }
  0x11   :  { %21 = dma.hbm_to_vmem [thread:$0]  %s225_s0, 512, %s16_s13, [#allocation3], %s165_s22, %s165_s22, %s166_s23  }
  0x12   :  { %160 = dma.done.wait [#allocation3], 512  }
  0x13   :  { %161 = vsyncadd [#allocation3], 4294966784  ;;  %v29_v0 = vld [vmem:[#allocation2] sm:$0xff]  ;;  %v30_v1 = vld [vmem:[#allocation2 + $0x8] sm:$0xff]  ;;  %v167_v12 = vmov 0   ;;  %s168_s29 = smov [#allocation5]  }
  0x14   :  { %v31_v2 = vld [vmem:[#allocation2 + $0x10] sm:$0xff]  ;;  %v33_v3 = vadd.f32 %v30_v1, %v29_v0  ;;  %v40_v4 = vmul.f32 %v29_v0, %v29_v0  ;;  %v41_v5 = vmul.f32 %v30_v1, %v30_v1  ;;  %v32_v6 = vld [vmem:[#allocation2 + $0x18] sm:$0xff]  ;;  %112 = vset.pattern.permute.xlu0 %v167_v12  ;;  %113 = vset.pattern.permute.xlu1 %v167_v12  ;;  %v59_v25 = vld [vmem:[%s226_s1] sm:$0xff]  ;;  %s95_s30 = sshll.u32 %s168_s29, 4  ;;  %s96_s30 = int_to_ptr.vmem [resolvable:$true] %s95_s30 }
  0x15   :  { %v42_v7 = vmul.f32 %v31_v2, %v31_v2  ;;  %v43_v8 = vmul.f32 %v32_v6, %v32_v6  ;;  %v36_v10 = vadd.f32 %v32_v6, %v31_v2  ;;  %v60_v28 = vld [vmem:[%s227_s2] sm:$0xff]  ;;  %s138_s1 = scalar_lea.vmem %s96_s30, 512  ;;  %p143_p9 = scmp.lt.s32.totalorder %s96_s30, %s96_s30 }
  0x16   :  { %34 = vadd.xlane.f32.xlu0 %v33_v3  ;;  %v44_v9 = vadd.f32 %v41_v5, %v40_v4  ;;  %p139_p8 = scmp.ne.s32.totalorder %s96_s30, %s138_s1  ;;  %p144_p10 = scmp.lt.s32.totalorder %s138_s1, %s138_s1 }
  0x17   :  { %v47_v11 = vadd.f32 %v43_v8, %v42_v7 }
  0x18   :  { %45 = vadd.xlane.f32.xlu1 %v44_v9  ;;  %p145_p11 = por %p144_p10, %p143_p9 }
  0x1a   :  { %37 = vadd.xlane.f32.xlu0 %v36_v10  ;;  %p146_p12 = pnand %p145_p11, %p139_p8 }
  0x1c   :  { %48 = vadd.xlane.f32.xlu1 %v47_v11 }
  0xa3   :  { %v35_v13 = vpop.xlane.xlu0 %34 }
  0xa5   :  { %v46_v14 = vpop.xlane.xlu1 %45 }
  0xa7   :  { %v38_v15 = vpop.xlane.xlu0 %37 }
  0xa8   :  { %v39_v16 = vadd.f32 %v38_v15, %v35_v13 }
  0xa9   :  { %v49_v17 = vpop.xlane.xlu1 %48 }
  0xaa   :  { %v52_v18 = vmul.f32 0.001953125, %v39_v16  ;;  %v50_v19 = vadd.f32 %v49_v17, %v46_v14 }
  0xac   :  { %v54_v20 = vmul.f32 %v52_v18, %v52_v18  ;;  %v53_v21 = vmul.f32 0.001953125, %v50_v19 }
  0xae   :  { %v55_v22 = vsub.f32 %v53_v21, %v54_v20 }
  0xb0   :  { %v56_v23 = vmax.f32 %v55_v22, 0.0 }
  0xb2   :  { %v57_v24 = vadd.f32 1e-05, %v56_v23 }
  0xb4   :  { %114 = vrsqrt.f32 %v57_v24 }
  0xbe   :  { %v115_v26 = vpop.eup %114 }
  0xbf   :  { %v61_v27 = vmul.f32 %v115_v26, %v59_v25 }
  0xc1   :  { %66 = vperm.xlu0 %112, %v61_v27   ;;  %v62_v29 = vmul.f32 %v61_v27, %v52_v18 }
  0xc3   :  { %v63_v30 = vsub.f32 %v60_v28, %v62_v29 }
  0xc5   :  { %75 = vperm.xlu1 %113, %v63_v30  }
 0x140   :  { %v67_v31 = vpop.permute.xlu0 %66 }
 0x141   :  { %v69_v32 = vmul.f32 %v67_v31, %v29_v0  ;;  %v70_v33 = vmul.f32 %v67_v31, %v30_v1  ;;  %v71_v34 = vmul.f32 %v67_v31, %v31_v2  ;;  %v72_v35 = vmul.f32 %v67_v31, %v32_v6 }
 0x144   :  { %v76_v36 = vpop.permute.xlu1 %75 }
 0x145   :  { %v78_v37 = vadd.f32 %v76_v36, %v69_v32  ;;  %v79_v38 = vadd.f32 %v76_v36, %v70_v33  ;;  %v80_v39 = vadd.f32 %v76_v36, %v71_v34  ;;  %v81_v40 = vadd.f32 %v76_v36, %v72_v35 }
 0x147   :  { %v82_v41 = vmax.f32 %v78_v37, 0.0  ;;  %v83_v42 = vmax.f32 %v79_v38, 0.0  ;;  %v84_v43 = vmax.f32 %v80_v39, 0.0  ;;  %v85_v44 = vmax.f32 %v81_v40, 0.0 }
 0x149   :  { %86 = vst [vmem:[#allocation5] sm:$0xff] %v82_v41  ;;  %87 = vst [vmem:[#allocation5 + $0x8] sm:$0xff] %v83_v42 }
 0x14a   :  { %88 = vst [vmem:[#allocation5 + $0x10] sm:$0xff] %v84_v43  ;;  %89 = vst [vmem:[#allocation5 + $0x18] sm:$0xff] %v85_v44 }
 0x14b   :  { %149 = shalt.err (!%p146_p12)
}
 0x14c   :  { %s150_s5 = scalar_lea.hbm %s228_s3, 512 }
 0x14d   :  { %p151_p13 = scmp.ne.s32.totalorder %s228_s3, %s150_s5  ;;  %p154_p0 = scmp.lt.u32.totalorder %s150_s5, %s228_s3 }
 0x14f   :  { %p156_p1 = pnand %p154_p0, %p151_p13 }
 0x151   :  { %159 = shalt.err (!%p156_p1)
}
 0x152   :  { %101 = dma.vmem_to_hbm [thread:$0]  %s96_s30, 512, %s228_s3, [#allocation4], %s165_s22, %s165_s22, %s166_s23  }
 0x153   :  { %162 = dma.done.wait [#allocation4], 512  }
 0x154   :  { %163 = vsyncadd [#allocation4], 4294966784 }
 0x155   :  { %105 = vsyncpa [#allocation3], 1 }
 0x156   :  { %106 = vsyncpa [#allocation4], 1 }

</bundles_post_ra>
